<compile_context>
chip_gen: v7x
topology: tpu7x:2x2x1
jax: 0.10.0
libtpu: 0.0.40
codegen_flags: <defaults>
</compile_context>

<pallas_src>
import functools
import numpy as np

import jax
import jax.numpy as jnp
from jax.experimental import pallas as pl
from jax.experimental.pallas import tpu as pltpu

HIDDEN = 32          # config.hidden_size
NUM_CTC_TYPE = 8     # config.num_ctc_type
AGGREGATOR = "avg"   # config.aggregator in {'sum', 'avg'}
LANE = 128           # TPU lane width / head-row padding bucket


# ----------------------------------------------------------------------------
# Kernel 1: token aggregation (token_sum / token_avg), transposed orientation
# ----------------------------------------------------------------------------
def _aggregate_kernel(indk_ref, indq_ref, statesT_ref, out_ref, *, avg, hidden):
    ik = indk_ref[...]                       # (S, 1)  int32  key tokens (sublanes)
    iq = indq_ref[...]                       # (1, TI) int32  query cells (lanes)
    mask = (ik == iq).astype(jnp.bfloat16)   # (S, TI) exact 0/1, single cast

    # statesT carries features on sublanes; for 'avg' it also carries one
    # all-ones row so the SAME MXU matmul emits per-cell token counts.
    res = jnp.dot(statesT_ref[...], mask,
                  preferred_element_type=jnp.float32)          # (HP, TI) f32

    if avg:
        counts = res[hidden:hidden + 1, :]                     # (1, TI) exact counts
        inv = pl.reciprocal(counts, approx=False)              # EUP, exact
        out_ref[...] = (res[:hidden, :] * inv).astype(out_ref.dtype)
    else:
        out_ref[...] = res[:hidden, :].astype(out_ref.dtype)


def aggregate(encoded_states, indicator, aggregator=AGGREGATOR, tile_rows=512):
    """Returns transposed cell states: (B, H, S) bfloat16 (lane-dense writes)."""
    B, S, H = encoded_states.shape
    avg = aggregator == "avg"

    # Largest lane-multiple row tile <= tile_rows that divides S, else whole S.
    TI = S
    for cand in range((min(tile_rows, S) // LANE) * LANE, 0, -LANE):
        if S % cand == 0:
            TI = cand
            break

    statesT = jnp.swapaxes(encoded_states, 1, 2).astype(jnp.bfloat16)  # (B, H, S)
    if avg:
        HP = H + 8                                    # keep sublanes a multiple of 8
        pad = jnp.zeros((B, 8, S), jnp.bfloat16).at[:, 0, :].set(1.0)
        statesT = jnp.concatenate([statesT, pad], axis=1)   # row H == ones (counts)
    else:
        HP = H

    ind = indicator.astype(jnp.int32)
    kern = functools.partial(_aggregate_kernel, avg=avg, hidden=H)
    return pl.pallas_call(
        kern,
        out_shape=jax.ShapeDtypeStruct((B, H, S), jnp.bfloat16),
        grid=(B, S // TI),
        in_specs=[
            pl.BlockSpec((None, S, 1), lambda b, i: (b, 0, 0)),    # key indicator
            pl.BlockSpec((None, 1, TI), lambda b, i: (b, 0, i)),   # query indicator tile
            pl.BlockSpec((None, HP, S), lambda b, i: (b, 0, 0)),   # statesT (+ ones row)
        ],
        out_specs=pl.BlockSpec((None, H, TI), lambda b, i: (b, 0, i)),
        compiler_params=pltpu.CompilerParams(
            dimension_semantics=("parallel", "parallel"),
            vmem_limit_bytes=32 * 1024 * 1024),        # fits v7x 64 MiB parts
    )(ind[:, :, None], ind[:, None, :], statesT)


# ----------------------------------------------------------------------------
# Kernel 2: fused sep/tok head = Linear -> tanh -> Linear -> argmax + masked CE
#           tiled over the padded row dim Np; bf16 MXU inputs; SMEM accumulators
# ----------------------------------------------------------------------------
def _heads_kernel(xT_ref, w1_ref, b1_ref, wp_ref, bp_ref, lab_ref, val_ref,
                  loss_ref, pred_ref, num_acc, cnt_acc):
    j = pl.program_id(1)

    @pl.when(j == 0)
    def _():
        num_acc[0] = 0.0
        cnt_acc[0] = 0.0

    x = xT_ref[...]                                               # (H, TN) bf16
    z = jnp.tanh(jnp.dot(w1_ref[...], x,
                         preferred_element_type=jnp.float32) + b1_ref[...])
    logits = jnp.dot(wp_ref[...], z.astype(jnp.bfloat16),
                     preferred_element_type=jnp.float32) + bp_ref[...]  # (C, TN)

    C = logits.shape[0]
    row = jax.lax.broadcasted_iota(jnp.int32, logits.shape, 0)    # class index

    # argmax over classes (sublane reduction) -> lane-dense (1, TN) prediction.
    m = jnp.max(logits, axis=0, keepdims=True)                    # (1, TN)
    pred = jnp.min(jnp.where(logits == m, row, C), axis=0, keepdims=True)
    pred_ref[...] = pred.astype(jnp.int32)

    # masked cross-entropy, accumulated across Np tiles in SMEM.
    labels = lab_ref[...]                                         # (1, TN) i32
    valid = val_ref[...]                                          # (1, TN) f32
    lse = m + jnp.log(jnp.sum(jnp.exp(logits - m), axis=0, keepdims=True))
    picked = jnp.sum(jnp.where(row == labels, logits, 0.0),
                     axis=0, keepdims=True)
    num_acc[0] += jnp.sum((lse - picked) * valid)
    cnt_acc[0] += jnp.sum(valid)

    @pl.when(j == pl.num_programs(1) - 1)
    def _():
        # Guard against a head with zero kept rows (avoid 0/0 = NaN).
        loss_ref[0, 0] = num_acc[0] / jnp.maximum(cnt_acc[0], 1.0)


def heads_forward(xT, w1, b1, wp, bp, labels, valid, tile_np=512):
    """xT: (2, H, Np) bf16; w1: (2, H, H) bf16 (PyTorch out,in layout);
    b1: (2, H, 1) f32; wp: (C, H) bf16; bp: (C, 1) f32; labels/valid: (2,1,Np)."""
    NH, H, Np = xT.shape
    C = wp.shape[0]

    TN = LANE
    for cand in (512, 384, 256, 128):
        if cand <= min(tile_np, Np) and Np % cand == 0:
            TN = cand
            break

    loss, pred = pl.pallas_call(
        _heads_kernel,
        out_shape=(jax.ShapeDtypeStruct((NH, 1, 1), jnp.float32),
                   jax.ShapeDtypeStruct((NH, 1, Np), jnp.int32)),
        grid=(NH, Np // TN),
        in_specs=[
            pl.BlockSpec((None, H, TN), lambda h, j: (h, 0, j)),  # x^T tile
            pl.BlockSpec((None, H, H), lambda h, j: (h, 0, 0)),   # W1 per head
            pl.BlockSpec((None, H, 1), lambda h, j: (h, 0, 0)),   # b1 per head
            pl.BlockSpec((C, H), lambda h, j: (0, 0)),            # shared predict W
            pl.BlockSpec((C, 1), lambda h, j: (0, 0)),            # shared predict b
            pl.BlockSpec((None, 1, TN), lambda h, j: (h, 0, j)),  # labels tile
            pl.BlockSpec((None, 1, TN), lambda h, j: (h, 0, j)),  # valid mask tile
        ],
        out_specs=(
            pl.BlockSpec((None, 1, 1), lambda h, j: (h, 0, 0),
                         memory_space=pltpu.MemorySpace.SMEM),    # scalar loss
            pl.BlockSpec((None, 1, TN), lambda h, j: (h, 0, j)),  # lane-dense pred
        ),
        scratch_shapes=[pltpu.SMEM((1,), jnp.float32),            # CE numerator
                        pltpu.SMEM((1,), jnp.float32)],           # valid count
        compiler_params=pltpu.CompilerParams(
            dimension_semantics=("parallel", "arbitrary")),
    )(xT, w1, b1, wp, bp, labels, valid)
    return loss, pred


# ----------------------------------------------------------------------------
# Module wrapper
# ----------------------------------------------------------------------------
class TctcHeadPallas:
    def __init__(self, key, hidden_size=HIDDEN, num_ctc_type=NUM_CTC_TYPE,
                 aggregator=AGGREGATOR):
        k1, k2, k3 = jax.random.split(key, 3)
        init = lambda k, shape: jax.random.normal(k, shape, jnp.float32) * 0.02
        # nn.Linear weights stored (out_features, in_features), like PyTorch.
        self.w_tok = init(k1, (hidden_size, hidden_size))
        self.b_tok = jnp.zeros((hidden_size,), jnp.float32)
        self.w_sep = init(k2, (hidden_size, hidden_size))
        self.b_sep = jnp.zeros((hidden_size,), jnp.float32)
        self.w_pred = init(k3, (num_ctc_type, hidden_size))
        self.b_pred = jnp.zeros((num_ctc_type,), jnp.float32)
        self.aggregator = aggregator

    def forward(self, encoded_states, indicator, tctc_label):
        B, S, H = encoded_states.shape

        # Launch the aggregation kernel first (async dispatch); the blocking
        # device->host label transfer and np.nonzero below overlap with it.
        cell_statesT = aggregate(encoded_states, indicator, self.aggregator)  # (B,H,S) bf16

        # TODO(synk): the label > -1 filter is data-dependent (dynamic shape), so it
        # stays host-side; kept rows are padded to a 128-row bucket and masked
        # in-kernel so launches stay lane-dense and recompiles only happen per bucket.
        flat_labels = np.asarray(tctc_label).reshape(-1)
        keep = np.nonzero(flat_labels > -1)[0]
        sep_idx, tok_idx = keep[0::2], keep[1::2]
        n_sep, n_tok = int(sep_idx.size), int(tok_idx.size)
        Np = max(LANE, -(-max(n_sep, n_tok, 1) // LANE) * LANE)

        def pad_idx(idx, n):
            out = np.zeros((Np,), np.int32)
            out[:n] = idx
            return out

        idx2 = jnp.asarray(np.stack([pad_idx(sep_idx, n_sep),
                                     pad_idx(tok_idx, n_tok)]))          # (2, Np)
        lab2 = np.zeros((2, 1, Np), np.int32)
        val2 = np.zeros((2, 1, Np), np.float32)
        lab2[0, 0, :n_sep] = flat_labels[sep_idx]
        lab2[1, 0, :n_tok] = flat_labels[tok_idx]
        val2[0, 0, :n_sep] = 1.0
        val2[1, 0, :n_tok] = 1.0

        # Device-side column gather of the already-transposed bf16 cell states.
        # TODO(synk): fold this gather into kernel 2 with scalar-prefetched row
        # indices (PrefetchScalarGridSpec) to remove the extra HBM round trip.
        flatT = jnp.reshape(jnp.swapaxes(cell_statesT, 0, 1), (H, B * S))  # (H, B*S)
        xT = jnp.moveaxis(flatT[:, idx2], 1, 0)                            # (2, H, Np)

        loss, pred = heads_forward(
            xT,
            jnp.stack([self.w_sep, self.w_tok]).astype(jnp.bfloat16),     # (2, H, H)
            jnp.stack([self.b_sep, self.b_tok])[:, :, None],              # (2, H, 1)
            self.w_pred.astype(jnp.bfloat16),                             # (C, H)
            self.b_pred[:, None],                                         # (C, 1)
            jnp.asarray(lab2),                                            # (2, 1, Np)
            jnp.asarray(val2),                                            # (2, 1, Np)
        )

        sep_labels = jnp.asarray(flat_labels[sep_idx].astype(np.int32))
        tok_labels = jnp.asarray(flat_labels[tok_idx].astype(np.int32))
        sep_out = (loss[0, 0, 0], pred[0, 0, :n_sep], sep_labels)
        tok_out = (loss[1, 0, 0], pred[1, 0, :n_tok], tok_labels)
        return (sep_out, tok_out)


# ----------------------------------------------------------------------------
if __name__ == "__main__":
    B, S, H, C = 2, 8, HIDDEN, NUM_CTC_TYPE

    key = jax.random.PRNGKey(0)
    k_param, k_states = jax.random.split(key)

    head = TctcHeadPallas(k_param, hidden_size=H, num_ctc_type=C, aggregator="avg")

    encoded_states = jax.random.normal(k_states, (B, S, H), jnp.float32)
    # indicator groups tokens into cells (equal values -> same cell)
    indicator = jnp.array([[0, 0, 1, 1, 2, 2, 3, 3],
                           [0, 1, 1, 2, 2, 3, 3, 3]], jnp.int32)
    # -1 marks positions dropped by the filter; remaining alternate sep/tok rows
    tctc_label = jnp.array([[1, 2, -1, 3, 4, 5, -1, 0],
                            [2, 3, 1, 0, -1, -1, 4, 5]], jnp.int32)

    sep_out, tok_out = head.forward(encoded_states, indicator, tctc_label)
    jax.block_until_ready((sep_out, tok_out))

    sep_loss, sep_pred, sep_labels = sep_out
    tok_loss, tok_pred, tok_labels = tok_out
    assert sep_loss.shape == () and tok_loss.shape == ()
    assert sep_pred.shape == sep_labels.shape
    assert tok_pred.shape == tok_labels.shape
    assert bool(jnp.isfinite(sep_loss)) and bool(jnp.isfinite(tok_loss))

    print("KERNEL_OK")
</pallas_src>

<mosaic_0001>
module attributes {stable_mosaic.version = 11 : i64} {
  func.func @_aggregate_kernel(%arg0: i32, %arg1: i32, %arg2: memref<1x8x1xi32, #tpu.memory_space<vmem>>, %arg3: memref<1x1x8xi32, #tpu.memory_space<vmem>>, %arg4: memref<1x40x8xbf16, #tpu.memory_space<vmem>>, %arg5: memref<1x32x8xbf16, #tpu.memory_space<vmem>>) attributes {dimension_semantics = [#tpu.dimension_semantics<parallel>, #tpu.dimension_semantics<parallel>], iteration_bounds = array<i64: 2, 1>, scalar_prefetch = 0 : i64, scratch_operands = 0 : i64, tpu.core_type = #tpu.core_type<tc>, window_params = [{transform_indices = @transform_0, window_bounds = array<i64: 1, 8, 1>}, {transform_indices = @transform_1, window_bounds = array<i64: 1, 1, 8>}, {transform_indices = @transform_2, window_bounds = array<i64: 1, 40, 8>}, {transform_indices = @transform_3, window_bounds = array<i64: 1, 32, 8>}]} {
    %c0 = arith.constant 0 : index
    %c0_0 = arith.constant 0 : index
    %c0_1 = arith.constant 0 : index
    %0 = vector.load %arg2[%c0, %c0_0, %c0_1] : memref<1x8x1xi32, #tpu.memory_space<vmem>>, vector<1x8x1xi32>
    %1 = vector.shape_cast %0 : vector<1x8x1xi32> to vector<8x1xi32>
    %c0_2 = arith.constant 0 : index
    %c0_3 = arith.constant 0 : index
    %c0_4 = arith.constant 0 : index
    %2 = vector.load %arg3[%c0_2, %c0_3, %c0_4] : memref<1x1x8xi32, #tpu.memory_space<vmem>>, vector<1x1x8xi32>
    %3 = vector.shape_cast %2 : vector<1x1x8xi32> to vector<1x8xi32>
    %4 = vector.broadcast %1 : vector<8x1xi32> to vector<8x8xi32>
    %5 = vector.broadcast %3 : vector<1x8xi32> to vector<8x8xi32>
    %6 = arith.cmpi eq, %4, %5 : vector<8x8xi32>
    %7 = arith.extui %6 : vector<8x8xi1> to vector<8x8xi32>
    %8 = arith.sitofp %7 : vector<8x8xi32> to vector<8x8xf32>
    %9 = arith.truncf %8 : vector<8x8xf32> to vector<8x8xbf16>
    %c0_5 = arith.constant 0 : index
    %c0_6 = arith.constant 0 : index
    %c0_7 = arith.constant 0 : index
    %10 = vector.load %arg4[%c0_5, %c0_6, %c0_7] : memref<1x40x8xbf16, #tpu.memory_space<vmem>>, vector<1x40x8xbf16>
    %11 = vector.shape_cast %10 : vector<1x40x8xbf16> to vector<40x8xbf16>
    %cst = arith.constant dense<0.000000e+00> : vector<40x8xf32>
    %12 = tpu.matmul %11, %9, %cst {dimension_numbers = #tpu.dot_dimension_numbers<[1], [0], [0], [1], [0, 0, 1, 1], [], []>} : vector<40x8xbf16>, vector<8x8xbf16>, vector<40x8xf32> -> vector<40x8xf32>
    %13 = vector.extract_strided_slice %12 {offsets = [32, 0], sizes = [1, 8], strides = [1, 1]} : vector<40x8xf32> to vector<1x8xf32>
    %14 = tpu.reciprocal %13 : vector<1x8xf32> -> vector<1x8xf32>
    %15 = vector.extract_strided_slice %12 {offsets = [0, 0], sizes = [32, 8], strides = [1, 1]} : vector<40x8xf32> to vector<32x8xf32>
    %16 = vector.broadcast %14 : vector<1x8xf32> to vector<32x8xf32>
    %17 = arith.mulf %15, %16 : vector<32x8xf32>
    %18 = arith.truncf %17 : vector<32x8xf32> to vector<32x8xbf16>
    %c0_8 = arith.constant 0 : index
    %c0_9 = arith.constant 0 : index
    %c0_10 = arith.constant 0 : index
    %19 = vector.load %arg5[%c0_8, %c0_9, %c0_10] : memref<1x32x8xbf16, #tpu.memory_space<vmem>>, vector<1x32x8xbf16>
    %20 = vector.shape_cast %19 : vector<1x32x8xbf16> to vector<32x8xbf16>
    %21 = vector.shape_cast %18 : vector<32x8xbf16> to vector<1x32x8xbf16>
    tpu.vector_store %arg5[%c0_8, %c0_9, %c0_10], %21 {strides = array<i32>} : memref<1x32x8xbf16, #tpu.memory_space<vmem>>, vector<1x32x8xbf16>,
    return
  }
  func.func @transform_0(%arg0: i32, %arg1: i32) -> (i32, i32, i32) {
    %c0_i32 = arith.constant 0 : i32
    %c0_i32_0 = arith.constant 0 : i32
    %c0_i32_1 = arith.constant 0 : i32
    return %arg0, %c0_i32, %c0_i32_0 : i32, i32, i32
  }
  func.func @transform_1(%arg0: i32, %arg1: i32) -> (i32, i32, i32) {
    %c0_i32 = arith.constant 0 : i32
    %c0_i32_0 = arith.constant 0 : i32
    return %arg0, %c0_i32, %arg1 : i32, i32, i32
  }
  func.func @transform_2(%arg0: i32, %arg1: i32) -> (i32, i32, i32) {
    %c0_i32 = arith.constant 0 : i32
    %c0_i32_0 = arith.constant 0 : i32
    %c0_i32_1 = arith.constant 0 : i32
    return %arg0, %c0_i32, %c0_i32_0 : i32, i32, i32
  }
  func.func @transform_3(%arg0: i32, %arg1: i32) -> (i32, i32, i32) {
    %c0_i32 = arith.constant 0 : i32
    %c0_i32_0 = arith.constant 0 : i32
    return %arg0, %c0_i32, %arg1 : i32, i32, i32
  }
}

</mosaic_0001>

<bundles_post_ra>
// kernel: tpu_custom_call.1
= control target key start
LH: loop header
LB: loop body
LE: loop exit
PB: predicated region body
PF: predicated region fallthrough
CT: control target
= control target key end

     0   :  { %s595_s12 = smov 0   ;;  %s597_s13 = smov 0   ;;  %s643_s0 = inlined_call_operand.vmem [shape: s32[2,8,1], index: 0, kind: input, shape index: {}]   ;;  %s644_s1 = inlined_call_operand.vmem [shape: s32[2,1,8], index: 1, kind: input, shape index: {}]   ;;  %s645_s2 = inlined_call_operand.vmem [shape: bf16[2,40,8], index: 2, kind: input, shape index: {}]   ;;  %s646_s3 = inlined_call_operand.vmem [shape: bf16[2,32,8], index: 3, kind: output, shape index: {}]  }
   0x1   :  { %s599_s14 = smov 0  }
   0x2 LB: > { %s25_s15 = sadd.s32 1, %s566_s13  ;;  %p470_p0 = scmp.ge.s32.totalorder %s570_s14, 1  ;;  %s570_s14 = sphi %s599_s14, %s13_s14   ;;  %s566_s13 = sphi %s597_s13, %s648_s13   ;;  %s562_s12 = sphi %s595_s12, %s647_s12  }
   0x3   : > { %p27_p1 = scmp.ge.s32.totalorder %s25_s15, 2  ;;  %p173_p2 = scmp.lt.s32.totalorder %s570_s14, 3 }
   0x5   : > { %s650_s15 = smov (%p27_p1, %s25_s15), 0  ;;  %p174_p3 = pnand %p470_p0, %p173_p2 }
   0x6   : > { %p210_p4 = scmp.lt.s32.totalorder (!%p174_p3), %s562_s12, 1  ;;  %v572_v0 = vmov (!%p174_p3), 0   ;;  %v573_v1 = vmov (!%p174_p3), 0.0   ;;  %vm574_vm0 = vmmov (!%p174_p3), 0   ;;  %vm275_vm2 = vcmask (!%p174_p3), 1043456  }
   0x7   : > { %177 = sbr.rel (%p174_p3) target bundleno = 393 (0x189), region = 32  ;;  %542 = vset.pattern.permute.xlu0 (!%p174_p3), %v572_v0  ;;  %498 = vmatprep.subr.bf16.mxu0 (!%p174_p3), %v573_v1  ;;  %vm265_vm3 = vcmask (!%p174_p3), 64512   ;;  %v336_v20 = vlaneseq (!%p174_p3)  ;;  %vm360_vm4 = vcmask (!%p174_p3), 60416  }
   0x8   : > { %512 = vmatprep.subr.bf16.mxu1 (!%p174_p3), %v573_v1  ;;  %504 = vmatprep.mubr.msk.bf16.mxu1 (!%p174_p3), %vm574_vm0, %v573_v1 }
   0x9   : > { %500 = vmatprep.mubr.msk.bf16.mxu0 (!%p174_p3), %vm574_vm0, %v573_v1  ;;  %v337_v24 = vshrl.u32 (!%p174_p3), %v336_v20, 7 }
   0xb   : > { %v338_v25 = vsub.s32 (!%p174_p3), 0, %v337_v24 }
   0xe   : > { %s652_s12 = smov (!%p210_p4, %s562_s12), 1 }
   0xf   : > { %s471_s16 = sshll.u32 %s652_s12, 3  ;;  %s514_s20 = smul.u32 20, %s652_s12 }
  0x10   : > { %s213_s19 = scalar_lea.vmem %s643_s0, %s471_s16  ;;  %s219_s26 = scalar_lea.vmem %s644_s1, %s652_s12 }
  0x11   : > { %v234_v2 = vld [vmem:[%s213_s19] sm:$0xff]  ;;  %s224_s23 = scalar_lea.vmem %s645_s2, %s514_s20  ;;  %s489_s27 = sshll.u32 %s652_s12, 4 }
  0x12   : > { %237 = vperm.xlu0 %542, %v234_v2   ;;  %v475_v3 = vld [vmem:[%s219_s26] ss:$0 sm:$0xff]  ;;  %v543_v8 = vld [vmem:[%s224_s23 + $0x8] sm:$0xff]   ;;  %v544_v10 = vld [vmem:[%s224_s23 + $0x10] ss:$0 sps:$4 sm:$0xff]   ;;  %s232_s30 = scalar_lea.vmem %s646_s3, %s489_s27 }
  0x13   : > { %v545_v9 = vld [vmem:[%s224_s23] sm:$0xff]  }
  0x91   : > { %v238_v4 = vpop.permute.xlu0 %237 }
  0x92   : > { %vm243_vm1 = vcmp.eq.s32.totalorder %v238_v4, %v475_v3 }
  0x93   : > { %v476_v5 = vsel %vm243_vm1, 1.0, %v573_v1 }
  0x94   : > { %v246_v6 = vpack.c.bf16 %v476_v5, %v476_v5 }
  0x96   : > { %v277_v7 = vsel %vm275_vm2, %v246_v6, 0 }
  0x97   : > { %499 = vmatpush3.bf16.msra.mxu0 %v277_v7  ;;  %513 = vmatpush3.bf16.msra.mxu1 %v277_v7 }
  0x9a   : > { %505 = vmatmul.mubr.msk.bf16.vlgmr.msra.gmra.mrb[0].mxu1 %vm265_vm3, %v543_v8  ;;  %501 = vmatmul.mubr.msk.bf16.vlgmr.msra.gmra.mrb[0].mxu0 %vm265_vm3, %v545_v9 }
  0x9b   : > { %508 = vmatprep.mubr.msk.bf16.mxu1 %vm574_vm0, %v573_v1 }
  0xa2   : > { %509 = vmatmul.mubr.msk.bf16.gmra.mrb[4].mxu1 %vm265_vm3, %v544_v10 }
 0x16d   : > { %v321_v11 = vpop.f32.mrb[0].mxu1  ;;  %v313_v12 = vpop.f32.mrb[0].mxu0 }
 0x16e   : > { %v506_v13 = vpop.f32.mrb[1].mxu1  ;;  %v502_v14 = vpop.f32.mrb[1].mxu0 }
 0x16f   : > { %v324_v15 = vpop.f32.mrb[2].mxu1  ;;  %v316_v16 = vpop.f32.mrb[2].mxu0 }
 0x170   : > { %v507_v17 = vpop.f32.mrb[3].mxu1  ;;  %v503_v18 = vpop.f32.mrb[3].mxu0 }
 0x175   : > { %v329_v19 = vpop.f32.mrb[4].mxu1 }
 0x176   : > { %546 = vrcp.f32 %v329_v19  ;;  %v510_v21 = vpop.f32.mrb[5].mxu1 }
 0x177   : > { %v332_v22 = vpop.f32.mrb[6].mxu1 }
 0x178   : > { %v511_v23 = vpop.f32.mrb[7].mxu1 }
 0x180   : > { %v547_v26 = vpop.eup %546 }
 0x181   : > { %v339_v27 = vrot.slane %v547_v26, %v338_v25 }
 0x183   : > { %v340_v28 = vmul.f32 %v339_v27, %v313_v12  ;;  %v342_v29 = vmul.f32 %v339_v27, %v321_v11  ;;  %v343_v30 = vmul.f32 %v339_v27, %v324_v15  ;;  %v341_v31 = vmul.f32 %v339_v27, %v316_v16 }
 0x185   : > { %v490_v32 = vpack.c.bf16 %v340_v28, %v340_v28  ;;  %v492_v33 = vpack.c.bf16 %v342_v29, %v342_v29  ;;  %v493_v34 = vpack.c.bf16 %v343_v30, %v343_v30  ;;  %v491_v35 = vpack.c.bf16 %v341_v31, %v341_v31 }
 0x187   : > { %361 = vst.msk [vmem:[%s232_s30] sm:$0xf] %vm360_vm4, %v490_v32  ;;  %363 = vst.msk [vmem:[%s232_s30 + $0x8] sm:$0xf] %vm360_vm4, %v492_v33 }
 0x188   : > { %364 = vst.msk [vmem:[%s232_s30 + $0xc] sm:$0xf] %vm360_vm4, %v493_v34  ;;  %362 = vst.msk [vmem:[%s232_s30 + $0x4] sm:$0xf] %vm360_vm4, %v491_v35 }
 0x189 PF: > { %s13_s14 = sadd.s32 1, %s570_s14   ;;  %s647_s12 = smov %s566_s13 }
 0x18a   : > { %p10_p5 = scmp.ge.s32.totalorder %s13_s14, 4   ;;  %s648_s13 = smov %s650_s15 }
 0x18c   :  { %12 = sbr.rel (!%p10_p5) target bundleno = 2 (0x2), region = 68 }

</bundles_post_ra>
